<compile_context>
chip_gen: v6e
topology: v6e:2x2x1
jax: 0.10.0
libtpu: 0.0.40
codegen_flags: <defaults>
</compile_context>

<pallas_src>
import functools

import jax
import jax.numpy as jnp
from jax.experimental import pallas as pl
from jax.experimental.pallas import tpu as pltpu


def _round_up(v, m):
    return (v + m - 1) // m * m


# ---------------------------------------------------------------------------
# Kernel: h = relu(x @ W1 + b1); out = h @ W234   (biases of layers 2-4 folded
# into W234 via the constant-1 hidden column carried by b1).
# ---------------------------------------------------------------------------
def qnet_kernel(x_ref, w1_ref, b1_ref, w2_ref, o_ref):
    x = x_ref[...]
    h = jnp.dot(x, w1_ref[...], preferred_element_type=jnp.float32) + b1_ref[...]
    h = jnp.maximum(h, 0.0)
    h = h.astype(w2_ref.dtype)
    o_ref[...] = jnp.dot(
        h, w2_ref[...], preferred_element_type=jnp.float32
    ).astype(o_ref.dtype)


# ---------------------------------------------------------------------------
# One-time parameter preparation (NOT on the per-call path).
# ---------------------------------------------------------------------------
def prepare_params(params, *, use_bf16=False, lane=128):
    """Fuse linear2/3/4 into one linear, fold biases, zero-pad to lane-dense shapes."""
    w1, b1, w2, b2, w3, b3, w4, b4 = [jnp.asarray(p, jnp.float32) for p in params]
    in_size, hidden = w1.shape
    out_size = w4.shape[1]
    assert hidden + 1 <= lane, "need one spare padded hidden column for the bias fold"

    # Exact algebraic fusion: no nonlinearity between layers 2-4 in the reference forward.
    w234 = w2 @ w3 @ w4                      # (hidden, out)
    b234 = (b2 @ w3 + b3) @ w4 + b4          # (1, out)

    h_pad = _round_up(hidden + 1, lane)
    wdt = jnp.bfloat16 if use_bf16 else jnp.float32

    # Layer 1, padded.  Column `hidden` is a constant-1 channel: its w1 column is zero and its
    # bias is 1, so relu(0 + 1) == 1 for every row -> it carries b234 through the second matmul.
    w1p = jnp.zeros((in_size, h_pad), jnp.float32).at[:, :hidden].set(w1)
    b1p = jnp.zeros((1, h_pad), jnp.float32).at[:, :hidden].set(b1)
    b1p = b1p.at[0, hidden].set(1.0)

    def pack_w2(n_cols):
        w = jnp.zeros((h_pad, n_cols), jnp.float32)
        w = w.at[:hidden, :out_size].set(w234)
        w = w.at[hidden, :out_size].set(b234[0])   # bias row, picked up by the 1-column of h
        return w.astype(wdt)

    prepared = dict(
        w1p=w1p.astype(wdt),
        b1p=b1p,                                   # bias add kept in f32
        w2p_wide=pack_w2(_round_up(out_size, lane)),   # lane-dense store (small B, unmasked vst)
        w2p_narrow=pack_w2(out_size),                  # minimal writeback (large B, 16x fewer bytes)
    )
    return prepared, in_size, out_size


def _choose_tiling(batch):
    """Pick (tile_rows, padded_batch).  Static (trace-time) decision."""
    b8 = _round_up(batch, 8)                 # f32 sublane multiple
    if b8 <= 16:
        return b8, b8                        # single tiny tile (latency path)
    if b8 <= 2048:
        # Exactly 2 balanced tiles so v7x's two TensorCores both get work
        # ("parallel" buys nothing on single-TC v5e/v6e but is harmless there).
        tb = _round_up((b8 + 1) // 2, 8)
        return tb, 2 * tb
    # Large batch: big tiles to amortize per-grid-step overhead (~0.35us/step).
    tb = 1024
    return tb, _round_up(b8, tb)


# ---------------------------------------------------------------------------
# Forward factory: prepares params once, returns a jitted forward(x).
# ---------------------------------------------------------------------------
def make_qnet_forward(params, *, use_bf16=False, narrow_output_threshold=1024):
    prepared, in_size, out_size = prepare_params(params, use_bf16=use_bf16)
    x_dtype = jnp.bfloat16 if use_bf16 else jnp.float32

    @jax.jit
    def forward(x):
        B, K = x.shape
        assert K == in_size
        x = x.astype(x_dtype)                # mirrors `x = x.float()` (or bf16 fast path)

        tb, b_pad = _choose_tiling(B)
        if b_pad != B:
            x = jnp.pad(x, ((0, b_pad - B), (0, 0)))

        narrow = B >= narrow_output_threshold
        w1p = prepared["w1p"]
        b1p = prepared["b1p"]
        w2p = prepared["w2p_narrow"] if narrow else prepared["w2p_wide"]
        H_pad = w1p.shape[1]
        N = w2p.shape[1]

        grid = (b_pad // tb,)
        flops = 2 * b_pad * (K * H_pad + H_pad * N)
        bytes_accessed = (
            x.dtype.itemsize * b_pad * K            # input stream
            + 4 * b_pad * N                         # output stream
            + w1p.size * w1p.dtype.itemsize
            + 4 * b1p.size
            + w2p.size * w2p.dtype.itemsize
        )

        out = pl.pallas_call(
            qnet_kernel,
            out_shape=jax.ShapeDtypeStruct((b_pad, N), jnp.float32),
            grid=grid,
            in_specs=[
                pl.BlockSpec((tb, K), lambda b: (b, 0)),       # stream x tiles
                pl.BlockSpec((K, H_pad), lambda b: (0, 0)),    # weights: VMEM-resident
                pl.BlockSpec((1, H_pad), lambda b: (0, 0)),
                pl.BlockSpec((H_pad, N), lambda b: (0, 0)),
            ],
            out_specs=pl.BlockSpec((tb, N), lambda b: (b, 0)),
            compiler_params=pltpu.CompilerParams(
                dimension_semantics=("parallel",)),            # shards tiles on v7x's 2 TCs
            cost_estimate=pl.CostEstimate(
                flops=flops, transcendentals=0, bytes_accessed=bytes_accessed),
        )(x, w1p, b1p, w2p)

        return out[:B, :out_size]

    return forward


# ---------------------------------------------------------------------------
# Reference / init helpers
# ---------------------------------------------------------------------------
def init_params(key, input_size, hidden_size, output_size):
    """Deterministic synthetic params. Weights stored (in, out); biases (1, out)."""
    ks = jax.random.split(key, 8)

    def init_linear(kw, kb, fan_in, fan_out):
        bound = 1.0 / jnp.sqrt(jnp.float32(fan_in))
        w = jax.random.uniform(kw, (fan_in, fan_out), jnp.float32, -bound, bound)
        b = jax.random.uniform(kb, (1, fan_out), jnp.float32, -bound, bound)
        return w, b

    w1, b1 = init_linear(ks[0], ks[1], input_size, hidden_size)
    w2, b2 = init_linear(ks[2], ks[3], hidden_size, hidden_size)
    w3, b3 = init_linear(ks[4], ks[5], hidden_size, hidden_size)
    w4, b4 = init_linear(ks[6], ks[7], hidden_size, output_size)
    return (w1, b1, w2, b2, w3, b3, w4, b4)


def reference_forward(x, params):
    w1, b1, w2, b2, w3, b3, w4, b4 = params
    h = jnp.maximum(x.astype(jnp.float32) @ w1 + b1, 0.0)
    h = h @ w2 + b2
    h = h @ w3 + b3
    return h @ w4 + b4


if __name__ == "__main__":
    key = jax.random.PRNGKey(0)
    k_x, k_x2, k_x3, k_p = jax.random.split(key, 4)

    input_size = 64      # game-state feature vector
    hidden_size = 32
    output_size = 8      # number of actions
    params = init_params(k_p, input_size, hidden_size, output_size)

    forward = make_qnet_forward(params)                     # f32, bit-faithful to x.float()
    forward_bf16 = make_qnet_forward(params, use_bf16=True) # fast path, relaxed precision

    # small batch (latency path: single tile, lane-dense output)
    x_small = jax.random.normal(k_x, (2, input_size), dtype=jnp.float32)
    out_small = jax.block_until_ready(forward(x_small))
    ref_small = reference_forward(x_small, params)
    assert out_small.shape == (2, output_size)
    assert jnp.allclose(out_small, ref_small, atol=1e-4, rtol=1e-4), "mismatch (B=2)"

    # mid batch (two balanced tiles -> both v7x TensorCores busy)
    x_mid = jax.random.normal(k_x2, (200, input_size), dtype=jnp.float32)
    out_mid = jax.block_until_ready(forward(x_mid))
    ref_mid = reference_forward(x_mid, params)
    assert out_mid.shape == (200, output_size)
    assert jnp.allclose(out_mid, ref_mid, atol=1e-4, rtol=1e-4), "mismatch (B=200)"

    # large batch (narrow 8-column writeback path)
    x_big = jax.random.normal(k_x3, (1536, input_size), dtype=jnp.float32)
    out_big = jax.block_until_ready(forward(x_big))
    ref_big = reference_forward(x_big, params)
    assert out_big.shape == (1536, output_size)
    assert jnp.allclose(out_big, ref_big, atol=1e-4, rtol=1e-4), "mismatch (B=1536)"

    # bf16 fast path (not bit-exact vs x.float(); loose tolerance)
    out_bf16 = jax.block_until_ready(forward_bf16(x_big))
    assert out_bf16.shape == (1536, output_size)
    assert jnp.allclose(out_bf16, ref_big, atol=1e-1, rtol=1e-1), "mismatch (bf16)"

    print("KERNEL_OK")
</pallas_src>

<mosaic_0001>
module attributes {stable_mosaic.version = 11 : i64} {
  func.func @qnet_kernel(%arg0: i32, %arg1: memref<8x64xf32, #tpu.memory_space<vmem>>, %arg2: memref<64x128xf32, #tpu.memory_space<vmem>>, %arg3: memref<1x128xf32, #tpu.memory_space<vmem>>, %arg4: memref<128x128xf32, #tpu.memory_space<vmem>>, %arg5: memref<8x128xf32, #tpu.memory_space<vmem>>) attributes {dimension_semantics = [#tpu.dimension_semantics<parallel>], iteration_bounds = array<i64: 1>, scalar_prefetch = 0 : i64, scratch_operands = 0 : i64, tpu.core_type = #tpu.core_type<tc>, window_params = [{transform_indices = @transform_0, window_bounds = array<i64: 8, 64>}, {pipeline_mode = #tpu.pipeline_mode<synchronous>, transform_indices = @transform_1, window_bounds = array<i64: 64, 128>}, {pipeline_mode = #tpu.pipeline_mode<synchronous>, transform_indices = @transform_2, window_bounds = array<i64: 1, 128>}, {pipeline_mode = #tpu.pipeline_mode<synchronous>, transform_indices = @transform_3, window_bounds = array<i64: 128, 128>}, {transform_indices = @transform_4, window_bounds = array<i64: 8, 128>}]} {
    %c0 = arith.constant 0 : index
    %c0_0 = arith.constant 0 : index
    %0 = vector.load %arg1[%c0, %c0_0] : memref<8x64xf32, #tpu.memory_space<vmem>>, vector<8x64xf32>
    %c0_1 = arith.constant 0 : index
    %c0_2 = arith.constant 0 : index
    %1 = vector.load %arg2[%c0_1, %c0_2] : memref<64x128xf32, #tpu.memory_space<vmem>>, vector<64x128xf32>
    %cst = arith.constant dense<0.000000e+00> : vector<8x128xf32>
    %2 = tpu.matmul %0, %1, %cst {dimension_numbers = #tpu.dot_dimension_numbers<[1], [0], [0], [1], [0, 0, 1, 1], [], []>} : vector<8x64xf32>, vector<64x128xf32>, vector<8x128xf32> -> vector<8x128xf32>
    %c0_3 = arith.constant 0 : index
    %c0_4 = arith.constant 0 : index
    %3 = vector.load %arg3[%c0_3, %c0_4] : memref<1x128xf32, #tpu.memory_space<vmem>>, vector<1x128xf32>
    %4 = vector.broadcast %3 : vector<1x128xf32> to vector<8x128xf32>
    %5 = arith.addf %2, %4 : vector<8x128xf32>
    %cst_5 = arith.constant 0.000000e+00 : f32
    %6 = vector.broadcast %cst_5 : f32 to vector<8x128xf32>
    %7 = arith.maximumf %5, %6 : vector<8x128xf32>
    %c0_6 = arith.constant 0 : index
    %c0_7 = arith.constant 0 : index
    %8 = vector.load %arg4[%c0_6, %c0_7] : memref<128x128xf32, #tpu.memory_space<vmem>>, vector<128x128xf32>
    %cst_8 = arith.constant dense<0.000000e+00> : vector<8x128xf32>
    %9 = tpu.matmul %7, %8, %cst_8 {dimension_numbers = #tpu.dot_dimension_numbers<[1], [0], [0], [1], [0, 0, 1, 1], [], []>} : vector<8x128xf32>, vector<128x128xf32>, vector<8x128xf32> -> vector<8x128xf32>
    %c0_9 = arith.constant 0 : index
    %c0_10 = arith.constant 0 : index
    %10 = vector.load %arg5[%c0_9, %c0_10] : memref<8x128xf32, #tpu.memory_space<vmem>>, vector<8x128xf32>
    tpu.vector_store %arg5[%c0_9, %c0_10], %9 {strides = array<i32>} : memref<8x128xf32, #tpu.memory_space<vmem>>, vector<8x128xf32>,
    return
  }
  func.func @transform_0(%arg0: i32) -> (i32, i32) {
    %c0_i32 = arith.constant 0 : i32
    %c0_i32_0 = arith.constant 0 : i32
    return %arg0, %c0_i32 : i32, i32
  }
  func.func @transform_1(%arg0: i32) -> (i32, i32) {
    %c0_i32 = arith.constant 0 : i32
    %c0_i32_0 = arith.constant 0 : i32
    %c0_i32_1 = arith.constant 0 : i32
    return %c0_i32, %c0_i32_0 : i32, i32
  }
  func.func @transform_2(%arg0: i32) -> (i32, i32) {
    %c0_i32 = arith.constant 0 : i32
    %c0_i32_0 = arith.constant 0 : i32
    %c0_i32_1 = arith.constant 0 : i32
    return %c0_i32, %c0_i32_0 : i32, i32
  }
  func.func @transform_3(%arg0: i32) -> (i32, i32) {
    %c0_i32 = arith.constant 0 : i32
    %c0_i32_0 = arith.constant 0 : i32
    %c0_i32_1 = arith.constant 0 : i32
    return %c0_i32, %c0_i32_0 : i32, i32
  }
  func.func @transform_4(%arg0: i32) -> (i32, i32) {
    %c0_i32 = arith.constant 0 : i32
    %c0_i32_0 = arith.constant 0 : i32
    return %arg0, %c0_i32 : i32, i32
  }
}

</mosaic_0001>

<bundles_post_ra>
// kernel: forward.1
= control target key start
LH: loop header
LB: loop body
LE: loop exit
PB: predicated region body
PF: predicated region fallthrough
CT: control target
= control target key end

     0   :  { %9 = vsyncpa [#allocation3], 0  ;;  %s433_s0 = inlined_call_operand.vmem [shape: f32[8,64], index: 0, kind: input, shape index: {}]   ;;  %s434_s1 = inlined_call_operand.hbm [shape: f32[64,128], index: 1, kind: input, shape index: {}]   ;;  %s435_s2 = inlined_call_operand.vmem [shape: f32[1,128], index: 2, kind: input, shape index: {}]   ;;  %s436_s3 = inlined_call_operand.hbm [shape: f32[128,128], index: 3, kind: input, shape index: {}]   ;;  %s437_s4 = inlined_call_operand.vmem [shape: f32[8,128], index: 4, kind: output, shape index: {}]  }
   0x1   :  { %10 = vsyncpa [#allocation5], 0  ;;  %s361_s15 = smov [#allocation2]  }
   0x2   :  { %s18_s16 = sshll.u32 %s361_s15, 4  ;;  %s19_s16 = int_to_ptr.vmem [resolvable:$true] %s18_s16 }
   0x3   :  { %s325_s17 = scalar_lea.vmem %s19_s16, 1024  ;;  %p330_p1 = scmp.lt.s32.totalorder %s19_s16, %s19_s16 }
   0x4   :  { %p326_p0 = scmp.ne.s32.totalorder %s19_s16, %s325_s17  ;;  %p331_p2 = scmp.lt.s32.totalorder %s325_s17, %s325_s17 }
   0x6   :  { %p332_p3 = por %p331_p2, %p330_p1 }
   0x8   :  { %p333_p4 = pnand %p332_p3, %p326_p0 }
   0xa   :  { %336 = shalt.err (!%p333_p4)
}
   0xb   :  { %s362_s18 = smov 128   ;;  %s363_s19 = smov 8  }
   0xc   :  { %24 = dma.hbm_to_vmem [thread:$0]  %s434_s1, 1024, %s19_s16, [#allocation3], %s362_s18, %s362_s18, %s363_s19  }
   0xd   :  { %s364_s22 = smov [#allocation4]  }
   0xe   :  { %s32_s23 = sshll.u32 %s364_s22, 4  ;;  %s33_s23 = int_to_ptr.vmem [resolvable:$true] %s32_s23 }
   0xf   :  { %s345_s24 = scalar_lea.vmem %s33_s23, 2048  ;;  %p350_p6 = scmp.lt.s32.totalorder %s33_s23, %s33_s23 }
  0x10   :  { %p346_p5 = scmp.ne.s32.totalorder %s33_s23, %s345_s24  ;;  %p351_p7 = scmp.lt.s32.totalorder %s345_s24, %s345_s24 }
  0x12   :  { %p352_p8 = por %p351_p7, %p350_p6 }
  0x14   :  { %p353_p9 = pnand %p352_p8, %p346_p5 }
  0x16   :  { %356 = shalt.err (!%p353_p9)
}
  0x17   :  { %38 = dma.hbm_to_vmem [thread:$0]  %s436_s3, 2048, %s33_s23, [#allocation5], %s362_s18, %s362_s18, %s363_s19  }
  0x18   :  { %357 = dma.done.wait [#allocation3], 1024  }
  0x19   :  { %358 = vsyncadd [#allocation3], 4294966272 }
  0x1a   :  { %359 = dma.done.wait [#allocation5], 2048  }
  0x1b   :  { %360 = vsyncadd [#allocation5], 4294965248  ;;  %v365_v0 = vmov 0.0   ;;  %vm366_vm0 = vmmov 0   ;;  %v53_v1 = vld [vmem:[#allocation2 + $0x38] sm:$0xff]  ;;  %v52_v2 = vld [vmem:[#allocation2 + $0x30] sm:$0xff] }
  0x1c   :  { %257 = vmatprep.subr.mxu0 %v365_v0  ;;  %273 = vmatprep.mubr.msk.f32.mxu0 %vm366_vm0, %v365_v0  ;;  %v51_v3 = vld [vmem:[#allocation2 + $0x28] sm:$0xff]  ;;  %v151_v4 = vld [vmem:[#allocation4 + $0x78] sm:$0xff]  ;;  %v150_v5 = vld [vmem:[#allocation4 + $0x70] sm:$0xff]  ;;  %vm61_vm1 = vcmask 523264  }
  0x1d   :  { %276 = vmatprep.subr.mxu1 %v365_v0  ;;  %308 = vmatprep.mubr.msk.f32.mxu1 %vm366_vm0, %v365_v0  ;;  %v50_v6 = vld [vmem:[#allocation2 + $0x20] sm:$0xff]  ;;  %v149_v7 = vld [vmem:[#allocation4 + $0x68] sm:$0xff]  ;;  %v49_v8 = vld [vmem:[#allocation2 + $0x18] sm:$0xff] }
  0x1e   :  { %258 = vmatpush3.msra.mxu0 %v53_v1  ;;  %277 = vmatpush3.msra.mxu1 %v151_v4  ;;  %v148_v9 = vld [vmem:[#allocation4 + $0x60] sm:$0xff]  ;;  %v48_v10 = vld [vmem:[#allocation2 + $0x10] sm:$0xff]  ;;  %v147_v11 = vld [vmem:[#allocation4 + $0x58] sm:$0xff] }
  0x1f   :  { %259 = vmatprep.subr.mxu0 %v365_v0  ;;  %278 = vmatprep.subr.mxu1 %v365_v0  ;;  %v47_v12 = vld [vmem:[#allocation2 + $0x8] sm:$0xff]  ;;  %v146_v13 = vld [vmem:[#allocation4 + $0x50] sm:$0xff]  ;;  %v46_v14 = vld [vmem:[#allocation2] sm:$0xff] }
  0x20   :  { %260 = vmatpush3.msra.mxu0 %v52_v2  ;;  %279 = vmatpush3.msra.mxu1 %v150_v5  ;;  %v45_v15 = vld [vmem:[%s433_s0] sm:$0xff]  ;;  %v145_v16 = vld [vmem:[#allocation4 + $0x48] sm:$0xff]  ;;  %v143_v18 = vld [vmem:[#allocation4 + $0x38] sm:$0xff] }
  0x21   :  { %261 = vmatprep.subr.mxu0 %v365_v0  ;;  %280 = vmatprep.subr.mxu1 %v365_v0  ;;  %v144_v17 = vld [vmem:[#allocation4 + $0x40] sm:$0xff]  ;;  %v142_v19 = vld [vmem:[#allocation4 + $0x30] sm:$0xff]  ;;  %v141_v20 = vld [vmem:[#allocation4 + $0x28] sm:$0xff] }
  0x22   :  { %262 = vmatpush3.msra.mxu0 %v51_v3  ;;  %281 = vmatpush3.msra.mxu1 %v149_v7  ;;  %v140_v21 = vld [vmem:[#allocation4 + $0x20] sm:$0xff]  ;;  %v139_v22 = vld [vmem:[#allocation4 + $0x18] sm:$0xff]  ;;  %v138_v23 = vld [vmem:[#allocation4 + $0x10] sm:$0xff] }
  0x23   :  { %263 = vmatprep.subr.mxu0 %v365_v0  ;;  %282 = vmatprep.subr.mxu1 %v365_v0  ;;  %v137_v24 = vld [vmem:[#allocation4 + $0x8] sm:$0xff]  ;;  %v136_v25 = vld [vmem:[#allocation4] sm:$0xff] }
  0x24   :  { %264 = vmatpush3.msra.mxu0 %v50_v6  ;;  %283 = vmatpush3.msra.mxu1 %v148_v9  ;;  %v229_v26 = vld [vmem:[%s435_s2] ss:$0 sm:$0xff] }
  0x25   :  { %265 = vmatprep.subr.mxu0 %v365_v0  ;;  %284 = vmatprep.subr.mxu1 %v365_v0 }
  0x26   :  { %266 = vmatpush3.msra.mxu0 %v49_v8  ;;  %285 = vmatpush3.msra.mxu1 %v147_v11 }
  0x27   :  { %267 = vmatprep.subr.mxu0 %v365_v0  ;;  %286 = vmatprep.subr.mxu1 %v365_v0 }
  0x28   :  { %268 = vmatpush3.msra.mxu0 %v48_v10  ;;  %287 = vmatpush3.msra.mxu1 %v146_v13 }
  0x29   :  { %269 = vmatprep.subr.mxu0 %v365_v0  ;;  %288 = vmatprep.subr.mxu1 %v365_v0 }
  0x2a   :  { %270 = vmatpush3.msra.mxu0 %v47_v12  ;;  %289 = vmatpush3.msra.mxu1 %v145_v16 }
  0x2b   :  { %271 = vmatprep.subr.mxu0 %v365_v0  ;;  %290 = vmatprep.subr.mxu1 %v365_v0 }
  0x2c   :  { %272 = vmatpush3.msra.mxu0 %v46_v14  ;;  %291 = vmatpush3.msra.mxu1 %v144_v17 }
  0x2d   :  { %274 = vmatmul.mubr.msk.f32.vlgmr.msra.gmra.mxu0 %vm61_vm1, %v45_v15  ;;  %292 = vmatprep.subr.mxu1 %v365_v0 }
  0x2e   :  { %293 = vmatpush3.msra.mxu1 %v143_v18 }
  0x2f   :  { %294 = vmatprep.subr.mxu1 %v365_v0 }
  0x30   :  { %295 = vmatpush3.msra.mxu1 %v142_v19 }
  0x31   :  { %296 = vmatprep.subr.mxu1 %v365_v0 }
  0x32   :  { %297 = vmatpush3.msra.mxu1 %v141_v20 }
  0x33   :  { %298 = vmatprep.subr.mxu1 %v365_v0 }
  0x34   :  { %299 = vmatpush3.msra.mxu1 %v140_v21 }
  0x35   :  { %300 = vmatprep.subr.mxu1 %v365_v0 }
  0x36   :  { %301 = vmatpush3.msra.mxu1 %v139_v22 }
  0x37   :  { %302 = vmatprep.subr.mxu1 %v365_v0 }
  0x38   :  { %303 = vmatpush3.msra.mxu1 %v138_v23 }
  0x39   :  { %304 = vmatprep.subr.mxu1 %v365_v0 }
  0x3a   :  { %305 = vmatpush3.msra.mxu1 %v137_v24 }
  0x3b   :  { %306 = vmatprep.subr.mxu1 %v365_v0 }
  0x3c   :  { %307 = vmatpush3.msra.mxu1 %v136_v25 }
  0xed   :  { %v131_v27 = vpop.f32.mrf.mxu0 }
  0xee   :  { %v132_v28 = vadd.f32 %v229_v26, %v131_v27 }
  0xef   :  { %v275_v29 = vpop.f32.mrf.mxu0 }
  0xf0   :  { %v135_v30 = vmax.f32 %v132_v28, 0.0 }
  0xf2   :  { %309 = vmatmul.mubr.f32.vlgmr.msra.gmra.mxu1 %v135_v30 }
 0x1b2   :  { %v218_v31 = vpop.f32.mrf.mxu1 }
 0x1b3   :  { %222 = vst [vmem:[%s437_s4] sm:$0xff] %v218_v31 }
 0x1b4   :  { %v310_v32 = vpop.f32.mrf.mxu1 }
 0x1b5   :  { %227 = vsyncpa [#allocation3], 1 }
 0x1b6   :  { %228 = vsyncpa [#allocation5], 1 }

</bundles_post_ra>
